<compile_context>
chip_gen: v7x
topology: tpu7x:2x2x1
jax: 0.10.0
libtpu: 0.0.40
codegen_flags: <defaults>
</compile_context>

<pallas_src>
import jax
import jax.numpy as jnp
from jax.experimental import pallas as pl
from jax.experimental.pallas import tpu as pltpu


# ----------------------------- kernel ---------------------------------------

def _autoencoder_kernel(x_ref, w1_ref, b1_ref, w23_ref, b23_ref,
                        w4_ref, b4_ref, o_ref):
    x = x_ref[...]                                                    # (TB, Df)
    # encoder Linear(D,4) + ReLU   (block-diagonal over the G folded groups)
    h = jnp.dot(x, w1_ref[...], preferred_element_type=jnp.float32) + b1_ref[...]
    h = jnp.maximum(h, 0.0)
    # composed Linear(4,2)·Linear(2,4) == Linear(4,4), then decoder ReLU
    h = jnp.dot(h, w23_ref[...], preferred_element_type=jnp.float32) + b23_ref[...]
    h = jnp.maximum(h, 0.0)
    # decoder Linear(4,D)
    y = jnp.dot(h, w4_ref[...], preferred_element_type=jnp.float32) + b4_ref[...]
    o_ref[...] = y.astype(o_ref.dtype)


# ----------------------------- sizing ----------------------------------------

_TILE_BYTES_TARGET = 6 * 1024 * 1024     # per x tile (2..6 MiB v6e, ~2x ok on v7x)
_VMEM_LIMIT_BYTES = 48 * 1024 * 1024     # 2 bufs x (x+out) tiles + weights + slack


def _round_up(a, m):
    return ((a + m - 1) // m) * m


def _pick_tile(bf, df, itemsize):
    """Rows per folded-batch tile and the padded folded batch.

    Returns (tb, bf_pad) with bf_pad % tb == 0.
    """
    tb = max(8, (_TILE_BYTES_TARGET // (df * itemsize) // 8) * 8)
    if bf >= 64:
        # keep >= 2 grid steps so the parallel axis can feed both v7x cores
        tb = min(tb, max(8, _round_up(-(-bf // 2), 8)))
    if bf <= tb:
        # single full-array block: legal regardless of the (8,128) rule, no pad
        return bf, bf
    if bf % 8 == 0:
        # try to find a tile that divides the batch -> no jnp.pad HBM copy
        for cand in range(tb, max(8, tb // 2) - 1, -8):
            if bf % cand == 0:
                return cand, bf
    return tb, _round_up(bf, tb)


# ----------------------------- params ----------------------------------------

def prepare_params(params):
    """One-time conversion of PyTorch-shaped params ((out,in) W, (out,) b).

    * transpose to (in,out), biases to (1,out)
    * compose the ReLU-free pair W2·W3 into one 4x4 (and its bias)
    * fold G = max(1, 128//D) batch rows per block row via block-diagonal
      weights (kron(I_G, W)) and G-tiled biases -> lane-dense activation tiles.
    Do this once, NOT per forward call.
    """
    w1 = params["w1"].T                      # (D, 4)
    b1 = params["b1"].reshape(1, -1)         # (1, 4)
    w2 = params["w2"].T                      # (4, 2)
    b2 = params["b2"].reshape(1, -1)         # (1, 2)
    w3 = params["w3"].T                      # (2, 4)
    b3 = params["b3"].reshape(1, -1)         # (1, 4)
    w4 = params["w4"].T                      # (4, D)
    b4 = params["b4"].reshape(1, -1)         # (1, D)

    # no nonlinearity between Linear(4,2) and Linear(2,4) -> exact composition
    w23 = w2 @ w3                            # (4, 4)
    b23 = b2 @ w3 + b3                       # (1, 4)

    d = w1.shape[0]
    g = max(1, 128 // d)                     # folded rows per block row
    eye = jnp.eye(g, dtype=w1.dtype)

    def blk(w):
        return jnp.kron(eye, w)              # block-diagonal, G copies

    def tile(b):
        return jnp.tile(b, (1, g))

    return (blk(w1), tile(b1), blk(w23), tile(b23), blk(w4), tile(b4))


# ----------------------------- wrapper ----------------------------------------

def autoencoder_forward(x, prepared):
    """x: (B, input_dim) float. prepared: output of prepare_params()."""
    B, D = x.shape
    w1, b1, w23, b23, w4, b4 = prepared
    G = w1.shape[0] // D                     # folding factor baked into weights
    Df = G * D                               # folded feature dim (lane axis)
    H = w1.shape[1]                          # G * 4
    itemsize = x.dtype.itemsize

    bf = -(-B // G)                          # folded batch (ceil)
    tb, bf_pad = _pick_tile(bf, Df, itemsize)
    b_pad = bf_pad * G
    if b_pad != B:
        x = jnp.pad(x, ((0, b_pad - B), (0, 0)))
    xf = x.reshape(bf_pad, Df)               # contiguous row-major -> free reshape

    grid = (bf_pad // tb,)

    flops = 2 * bf_pad * (Df * H + H * H + H * Df)
    bytes_accessed = (2 * bf_pad * Df
                      + w1.size + b1.size + w23.size + b23.size
                      + w4.size + b4.size) * itemsize

    def const_spec(a):
        # whole-array block, same block every grid step -> resident in VMEM
        return pl.BlockSpec(a.shape, lambda i: (0, 0))

    out = pl.pallas_call(
        _autoencoder_kernel,
        out_shape=jax.ShapeDtypeStruct((bf_pad, Df), x.dtype),
        grid=grid,
        in_specs=[pl.BlockSpec((tb, Df), lambda i: (i, 0)),
                  const_spec(w1), const_spec(b1),
                  const_spec(w23), const_spec(b23),
                  const_spec(w4), const_spec(b4)],
        out_specs=pl.BlockSpec((tb, Df), lambda i: (i, 0)),
        compiler_params=pltpu.CompilerParams(
            dimension_semantics=("parallel",),
            vmem_limit_bytes=_VMEM_LIMIT_BYTES),
        cost_estimate=pl.CostEstimate(
            flops=flops, transcendentals=0, bytes_accessed=bytes_accessed),
    )(xf, w1, b1, w23, b23, w4, b4)

    out = out.reshape(b_pad, D)
    if b_pad != B:
        out = out[:B]
    return out


# ----------------------------- test harness ----------------------------------

def init_params(key, input_dim):
    """Deterministic synthetic parameters matching the PyTorch module shapes."""
    keys = jax.random.split(key, 8)

    def lin(kw, kb, out_f, in_f):
        bound = 1.0 / jnp.sqrt(in_f)
        w = jax.random.uniform(kw, (out_f, in_f), jnp.float32, -bound, bound)
        b = jax.random.uniform(kb, (out_f,), jnp.float32, -bound, bound)
        return w, b

    w1, b1 = lin(keys[0], keys[1], 4, input_dim)   # encoder Linear(input_dim, 4)
    w2, b2 = lin(keys[2], keys[3], 2, 4)           # encoder Linear(4, 2)
    w3, b3 = lin(keys[4], keys[5], 4, 2)           # decoder Linear(2, 4)
    w4, b4 = lin(keys[6], keys[7], input_dim, 4)   # decoder Linear(4, input_dim)
    return dict(w1=w1, b1=b1, w2=w2, b2=b2, w3=w3, b3=b3, w4=w4, b4=b4)


def reference_forward(x, p):
    h = jnp.maximum(x @ p["w1"].T + p["b1"], 0.0)
    z = h @ p["w2"].T + p["b2"]
    h = jnp.maximum(z @ p["w3"].T + p["b3"], 0.0)
    return h @ p["w4"].T + p["b4"]


def _run_case(key, batch, input_dim):
    k_x, k_p = jax.random.split(key)
    x = jax.random.normal(k_x, (batch, input_dim), dtype=jnp.float32)
    params = init_params(k_p, input_dim)
    prepared = jax.block_until_ready(prepare_params(params))  # one-time prep

    out = jax.jit(autoencoder_forward)(x, prepared)
    out = jax.block_until_ready(out)

    ref = reference_forward(x, params)
    assert out.shape == (batch, input_dim)
    assert jnp.allclose(out, ref, atol=1e-5, rtol=1e-5), (
        f"mismatch vs pure-JAX reference (B={batch}, D={input_dim})")


if __name__ == "__main__":
    key = jax.random.PRNGKey(0)
    k1, k2 = jax.random.split(key)

    # small demo shape: D=16 -> G=8, one lane-dense (1, 128) block, no padding
    _run_case(k1, batch=8, input_dim=16)
    # larger ragged case: exercises folding with D∤128, padding and grid >= 2
    _run_case(k2, batch=300, input_dim=48)

    print("KERNEL_OK")
</pallas_src>

<mosaic_0001>
module attributes {stable_mosaic.version = 11 : i64} {
  func.func @_autoencoder_kernel(%arg0: i32, %arg1: memref<1x128xf32, #tpu.memory_space<vmem>>, %arg2: memref<128x32xf32, #tpu.memory_space<vmem>>, %arg3: memref<1x32xf32, #tpu.memory_space<vmem>>, %arg4: memref<32x32xf32, #tpu.memory_space<vmem>>, %arg5: memref<1x32xf32, #tpu.memory_space<vmem>>, %arg6: memref<32x128xf32, #tpu.memory_space<vmem>>, %arg7: memref<1x128xf32, #tpu.memory_space<vmem>>, %arg8: memref<1x128xf32, #tpu.memory_space<vmem>>) attributes {dimension_semantics = [#tpu.dimension_semantics<parallel>], iteration_bounds = array<i64: 1>, scalar_prefetch = 0 : i64, scratch_operands = 0 : i64, tpu.core_type = #tpu.core_type<tc>, window_params = [{transform_indices = @transform_0, window_bounds = array<i64: 1, 128>}, {pipeline_mode = #tpu.pipeline_mode<synchronous>, transform_indices = @transform_1, window_bounds = array<i64: 128, 32>}, {pipeline_mode = #tpu.pipeline_mode<synchronous>, transform_indices = @transform_2, window_bounds = array<i64: 1, 32>}, {pipeline_mode = #tpu.pipeline_mode<synchronous>, transform_indices = @transform_3, window_bounds = array<i64: 32, 32>}, {pipeline_mode = #tpu.pipeline_mode<synchronous>, transform_indices = @transform_4, window_bounds = array<i64: 1, 32>}, {pipeline_mode = #tpu.pipeline_mode<synchronous>, transform_indices = @transform_5, window_bounds = array<i64: 32, 128>}, {pipeline_mode = #tpu.pipeline_mode<synchronous>, transform_indices = @transform_6, window_bounds = array<i64: 1, 128>}, {transform_indices = @transform_7, window_bounds = array<i64: 1, 128>}]} {
    %c0 = arith.constant 0 : index
    %c0_0 = arith.constant 0 : index
    %0 = vector.load %arg1[%c0, %c0_0] : memref<1x128xf32, #tpu.memory_space<vmem>>, vector<1x128xf32>
    %c0_1 = arith.constant 0 : index
    %c0_2 = arith.constant 0 : index
    %1 = vector.load %arg2[%c0_1, %c0_2] : memref<128x32xf32, #tpu.memory_space<vmem>>, vector<128x32xf32>
    %cst = arith.constant dense<0.000000e+00> : vector<1x32xf32>
    %2 = tpu.matmul %0, %1, %cst {dimension_numbers = #tpu.dot_dimension_numbers<[1], [0], [0], [1], [0, 0, 1, 1], [], []>} : vector<1x128xf32>, vector<128x32xf32>, vector<1x32xf32> -> vector<1x32xf32>
    %c0_3 = arith.constant 0 : index
    %c0_4 = arith.constant 0 : index
    %3 = vector.load %arg3[%c0_3, %c0_4] : memref<1x32xf32, #tpu.memory_space<vmem>>, vector<1x32xf32>
    %4 = arith.addf %2, %3 : vector<1x32xf32>
    %cst_5 = arith.constant 0.000000e+00 : f32
    %5 = vector.broadcast %cst_5 : f32 to vector<1x32xf32>
    %6 = arith.maximumf %4, %5 : vector<1x32xf32>
    %c0_6 = arith.constant 0 : index
    %c0_7 = arith.constant 0 : index
    %7 = vector.load %arg4[%c0_6, %c0_7] : memref<32x32xf32, #tpu.memory_space<vmem>>, vector<32x32xf32>
    %cst_8 = arith.constant dense<0.000000e+00> : vector<1x32xf32>
    %8 = tpu.matmul %6, %7, %cst_8 {dimension_numbers = #tpu.dot_dimension_numbers<[1], [0], [0], [1], [0, 0, 1, 1], [], []>} : vector<1x32xf32>, vector<32x32xf32>, vector<1x32xf32> -> vector<1x32xf32>
    %c0_9 = arith.constant 0 : index
    %c0_10 = arith.constant 0 : index
    %9 = vector.load %arg5[%c0_9, %c0_10] : memref<1x32xf32, #tpu.memory_space<vmem>>, vector<1x32xf32>
    %10 = arith.addf %8, %9 : vector<1x32xf32>
    %cst_11 = arith.constant 0.000000e+00 : f32
    %11 = vector.broadcast %cst_11 : f32 to vector<1x32xf32>
    %12 = arith.maximumf %10, %11 : vector<1x32xf32>
    %c0_12 = arith.constant 0 : index
    %c0_13 = arith.constant 0 : index
    %13 = vector.load %arg6[%c0_12, %c0_13] : memref<32x128xf32, #tpu.memory_space<vmem>>, vector<32x128xf32>
    %cst_14 = arith.constant dense<0.000000e+00> : vector<1x128xf32>
    %14 = tpu.matmul %12, %13, %cst_14 {dimension_numbers = #tpu.dot_dimension_numbers<[1], [0], [0], [1], [0, 0, 1, 1], [], []>} : vector<1x32xf32>, vector<32x128xf32>, vector<1x128xf32> -> vector<1x128xf32>
    %c0_15 = arith.constant 0 : index
    %c0_16 = arith.constant 0 : index
    %15 = vector.load %arg7[%c0_15, %c0_16] : memref<1x128xf32, #tpu.memory_space<vmem>>, vector<1x128xf32>
    %16 = arith.addf %14, %15 : vector<1x128xf32>
    %c0_17 = arith.constant 0 : index
    %c0_18 = arith.constant 0 : index
    %17 = vector.load %arg8[%c0_17, %c0_18] : memref<1x128xf32, #tpu.memory_space<vmem>>, vector<1x128xf32>
    tpu.vector_store %arg8[%c0_17, %c0_18], %16 {strides = array<i32>} : memref<1x128xf32, #tpu.memory_space<vmem>>, vector<1x128xf32>,
    return
  }
  func.func @transform_0(%arg0: i32) -> (i32, i32) {
    %c0_i32 = arith.constant 0 : i32
    %c0_i32_0 = arith.constant 0 : i32
    return %arg0, %c0_i32 : i32, i32
  }
  func.func @transform_1(%arg0: i32) -> (i32, i32) {
    %c0_i32 = arith.constant 0 : i32
    %c0_i32_0 = arith.constant 0 : i32
    %c0_i32_1 = arith.constant 0 : i32
    return %c0_i32, %c0_i32_0 : i32, i32
  }
  func.func @transform_2(%arg0: i32) -> (i32, i32) {
    %c0_i32 = arith.constant 0 : i32
    %c0_i32_0 = arith.constant 0 : i32
    %c0_i32_1 = arith.constant 0 : i32
    return %c0_i32, %c0_i32_0 : i32, i32
  }
  func.func @transform_3(%arg0: i32) -> (i32, i32) {
    %c0_i32 = arith.constant 0 : i32
    %c0_i32_0 = arith.constant 0 : i32
    %c0_i32_1 = arith.constant 0 : i32
    return %c0_i32, %c0_i32_0 : i32, i32
  }
  func.func @transform_4(%arg0: i32) -> (i32, i32) {
    %c0_i32 = arith.constant 0 : i32
    %c0_i32_0 = arith.constant 0 : i32
    %c0_i32_1 = arith.constant 0 : i32
    return %c0_i32, %c0_i32_0 : i32, i32
  }
  func.func @transform_5(%arg0: i32) -> (i32, i32) {
    %c0_i32 = arith.constant 0 : i32
    %c0_i32_0 = arith.constant 0 : i32
    %c0_i32_1 = arith.constant 0 : i32
    return %c0_i32, %c0_i32_0 : i32, i32
  }
  func.func @transform_6(%arg0: i32) -> (i32, i32) {
    %c0_i32 = arith.constant 0 : i32
    %c0_i32_0 = arith.constant 0 : i32
    %c0_i32_1 = arith.constant 0 : i32
    return %c0_i32, %c0_i32_0 : i32, i32
  }
  func.func @transform_7(%arg0: i32) -> (i32, i32) {
    %c0_i32 = arith.constant 0 : i32
    %c0_i32_0 = arith.constant 0 : i32
    return %arg0, %c0_i32 : i32, i32
  }
}

</mosaic_0001>

<bundles_post_ra>
// kernel: autoencoder_forward.1
= control target key start
LH: loop header
LB: loop body
LE: loop exit
PB: predicated region body
PF: predicated region fallthrough
CT: control target
= control target key end

     0   :  { %v403_v0 = vmov 0.0|0.0   ;;  %vm404_vm0 = vmmov 0   ;;  %v405_v4 = vmov 0.0   ;;  %vm120_vm1 = vcmask 261120   ;;  %s553_s1 = inlined_call_operand.vmem [shape: f32[128,32], index: 1, kind: input, shape index: {}]   ;;  %s554_s3 = inlined_call_operand.vmem [shape: f32[32,32], index: 3, kind: input, shape index: {}]   ;;  %s555_s0 = inlined_call_operand.vmem [shape: f32[1,128], index: 0, kind: input, shape index: {}]   ;;  %s556_s2 = inlined_call_operand.vmem [shape: f32[1,32], index: 2, kind: input, shape index: {}]   ;;  %s557_s5 = inlined_call_operand.vmem [shape: f32[32,128], index: 5, kind: input, shape index: {}]   ;;  %s558_s4 = inlined_call_operand.vmem [shape: f32[1,32], index: 4, kind: input, shape index: {}]   ;;  %s559_s6 = inlined_call_operand.vmem [shape: f32[1,128], index: 6, kind: input, shape index: {}]   ;;  %s560_s7 = inlined_call_operand.vmem [shape: f32[1,128], index: 7, kind: output, shape index: {}]  }
   0x1   :  { %364 = vmatprep.subr.bf16.mxu0 %v403_v0  ;;  %v27_v1 = vld [vmem:[%s553_s1] sm:$0xff]  ;;  %v28_v2 = vld [vmem:[%s553_s1 + $0x8] sm:$0xff]  ;;  %v29_v3 = vld [vmem:[%s553_s1 + $0x10] sm:$0xff]  ;;  %339 = vmatprep.mubr.msk.f32.mxu0 %vm404_vm0, %v405_v4 }
   0x2   :  { %v365_v5 = vpack.c.bf16 %v28_v2, %v27_v1  ;;  %v30_v6 = vld [vmem:[%s553_s1 + $0x18] sm:$0xff]  ;;  %388 = vmatprep.subr.bf16.mxu1 %v403_v0  ;;  %350 = vmatprep.mubr.msk.f32.mxu1 %vm404_vm0, %v405_v4  ;;  %v31_v8 = vld [vmem:[%s553_s1 + $0x20] sm:$0xff]  ;;  %v32_v9 = vld [vmem:[%s553_s1 + $0x28] sm:$0xff] }
   0x3   :  { %v368_v7 = vpack.c.bf16 %v30_v6, %v29_v3  ;;  %v115_v10 = vld [vmem:[%s554_s3] sm:$0xff]  ;;  %v116_v11 = vld [vmem:[%s554_s3 + $0x8] sm:$0xff]  ;;  %v371_v12 = vpack.c.bf16 %v32_v9, %v31_v8  ;;  %v33_v14 = vld [vmem:[%s553_s1 + $0x30] sm:$0xff] }
   0x4   :  { %366 = vmatpush3.bf16.msra.mxu0 %v365_v5  ;;  %v389_v13 = vpack.c.bf16 %v116_v11, %v115_v10  ;;  %v34_v15 = vld [vmem:[%s553_s1 + $0x38] sm:$0xff]  ;;  %v35_v17 = vld [vmem:[%s553_s1 + $0x40] sm:$0xff]  ;;  %v36_v18 = vld [vmem:[%s553_s1 + $0x48] sm:$0xff] }
   0x5   :  { %367 = vmatprep.subr.bf16.mxu0 %v403_v0  ;;  %v374_v16 = vpack.c.bf16 %v34_v15, %v33_v14  ;;  %v377_v19 = vpack.c.bf16 %v36_v18, %v35_v17  ;;  %v37_v20 = vld [vmem:[%s553_s1 + $0x50] sm:$0xff]  ;;  %v38_v21 = vld [vmem:[%s553_s1 + $0x58] sm:$0xff]  ;;  %v39_v23 = vld [vmem:[%s553_s1 + $0x60] sm:$0xff] }
   0x6   :  { %390 = vmatpush3.bf16.msra.mxu1 %v389_v13  ;;  %v380_v22 = vpack.c.bf16 %v38_v21, %v37_v20  ;;  %v40_v24 = vld [vmem:[%s553_s1 + $0x68] sm:$0xff]  ;;  %v41_v26 = vld [vmem:[%s553_s1 + $0x70] sm:$0xff]  ;;  %v42_v27 = vld [vmem:[%s553_s1 + $0x78] sm:$0xff] }
   0x7   :  { %391 = vmatprep.subr.bf16.mxu1 %v403_v0  ;;  %v383_v25 = vpack.c.bf16 %v40_v24, %v39_v23  ;;  %v386_v28 = vpack.c.bf16 %v42_v27, %v41_v26  ;;  %v26_v29 = vld [vmem:[%s555_s0] sm:$0x1]  ;;  %v117_v30 = vld [vmem:[%s554_s3 + $0x10] sm:$0xff]  ;;  %v118_v31 = vld [vmem:[%s554_s3 + $0x18] sm:$0xff] }
   0x8   :  { %369 = vmatpush3.bf16.msra.mxu0 %v368_v7  ;;  %v392_v32 = vpack.c.bf16 %v118_v31, %v117_v30  ;;  %v43_v33 = vld [vmem:[%s556_s2] sm:$0x1]  ;;  %v196_v35 = vld [vmem:[%s557_s5 + $0x8] sm:$0xff]  ;;  %v197_v41 = vld [vmem:[%s557_s5 + $0x10] sm:$0xff] }
   0x9   :  { %370 = vmatprep.subr.bf16.mxu0 %v403_v0  ;;  %v195_v34 = vld [vmem:[%s557_s5] sm:$0xff]  ;;  %v198_v42 = vld [vmem:[%s557_s5 + $0x18] sm:$0xff] }
   0xa   :  { %393 = vmatpush3.bf16.msra.mxu1 %v392_v32  ;;  %v395_v39 = vpack.c.bf16 %v196_v35, %v195_v34  ;;  %v398_v43 = vpack.c.bf16 %v198_v42, %v197_v41  ;;  %v119_v44 = vld [vmem:[%s558_s4] sm:$0x1] }
   0xb   :  { %394 = vmatprep.subr.bf16.mxu1 %v403_v0  ;;  %v199_v49 = vld [vmem:[%s559_s6] sm:$0x1] }
   0xc   :  { %372 = vmatpush3.bf16.msra.mxu0 %v371_v12 }
   0xd   :  { %373 = vmatprep.subr.bf16.mxu0 %v403_v0 }
  0x10   :  { %375 = vmatpush3.bf16.msra.mxu0 %v374_v16 }
  0x11   :  { %376 = vmatprep.subr.bf16.mxu0 %v403_v0 }
  0x14   :  { %378 = vmatpush3.bf16.msra.mxu0 %v377_v19 }
  0x15   :  { %379 = vmatprep.subr.bf16.mxu0 %v403_v0 }
  0x18   :  { %381 = vmatpush3.bf16.msra.mxu0 %v380_v22 }
  0x19   :  { %382 = vmatprep.subr.bf16.mxu0 %v403_v0 }
  0x1c   :  { %384 = vmatpush3.bf16.msra.mxu0 %v383_v25 }
  0x1d   :  { %385 = vmatprep.subr.bf16.mxu0 %v403_v0 }
  0x20   :  { %387 = vmatpush3.bf16.msra.mxu0 %v386_v28 }
  0x23   :  { %340 = vmatmul.mubr.f32.vlgmr.msra.gmra.mrb[0].mxu0 %v26_v29 }
  0xf6   :  { %v110_v36 = vpop.f32.mrb[0].mxu0 }
  0xf7   :  { %v111_v37 = vadd.f32 %v110_v36, %v43_v33  ;;  %v341_v38 = vpop.f32.mrb[1].mxu0 }
  0xf9   :  { %v114_v40 = vmax.f32 %v111_v37, 0.0 }
  0xfb   :  { %351 = vmatmul.mubr.msk.f32.vlgmr.msra.gmra.mrb[0].mxu1 %vm120_vm1, %v114_v40 }
  0xfc   :  { %396 = vmatpush3.bf16.msra.mxu1 %v395_v39  ;;  %361 = vmatprep.mubr.msk.f32.mxu1 %vm404_vm0, %v405_v4 }
  0xfd   :  { %397 = vmatprep.subr.bf16.mxu1 %v403_v0 }
 0x100   :  { %399 = vmatpush3.bf16.msra.mxu1 %v398_v43 }
 0x1ce   :  { %v190_v45 = vpop.f32.mrb[0].mxu1 }
 0x1cf   :  { %v191_v46 = vadd.f32 %v190_v45, %v119_v44  ;;  %v352_v47 = vpop.f32.mrb[1].mxu1 }
 0x1d1   :  { %v194_v48 = vmax.f32 %v191_v46, 0.0 }
 0x1d3   :  { %362 = vmatmul.mubr.msk.f32.vlgmr.msra.gmra.mrb[2].mxu1 %vm120_vm1, %v194_v48 }
 0x2a6   :  { %v269_v50 = vpop.f32.mrb[2].mxu1 }
 0x2a7   :  { %v270_v51 = vadd.f32 %v269_v50, %v199_v49  ;;  %v363_v52 = vpop.f32.mrb[3].mxu1 }
 0x2a9   :  { %273 = vst [vmem:[%s560_s7] sm:$0x1] %v270_v51 }

</bundles_post_ra>
